<compile_context>
chip_gen: v7x
topology: tpu7x:2x2x1
jax: 0.10.0
libtpu: 0.0.40
codegen_flags: <defaults>
</compile_context>

<pallas_src>
import jax
import jax.numpy as jnp
from jax.experimental import pallas as pl
from jax.experimental.pallas import tpu as pltpu


def _round_up(n, m):
    return ((n + m - 1) // m) * m


def _se_attention_kernel(x_ref, w1t_ref, w2t_ref, o_ref):
    x = x_ref[...]          # (TB, C) f32 (last block may contain masked rows)
    w1t = w1t_ref[...]      # (C, H)  — transposed once in the wrapper
    w2t = w2t_ref[...]      # (H, C)  — transposed once in the wrapper

    # fc[0] + fc[1]: h = ReLU(x @ w1t)   (MXU, contraction K = C)
    h = jnp.maximum(jnp.dot(x, w1t, preferred_element_type=jnp.float32), 0.0)

    # fc[2]: y = h @ w2t                 (MXU, tiny K = H; MXU is otherwise idle)
    y = jnp.dot(h, w2t, preferred_element_type=jnp.float32)

    # fc[3] + channel scaling: out = x * sigmoid(y)
    o_ref[...] = (x * jax.nn.sigmoid(y)).astype(o_ref.dtype)


def se_attention(x, w1, w2, a=None, aa=None, aaa=None, *, block_b=1536):
    """SEAttention forward.

    x : (B, C) float32
    w1: (H, C)  PyTorch Linear(C -> H, bias=False).weight
    w2: (C, H)  PyTorch Linear(H -> C, bias=False).weight
    a, aa, aaa: unused (kept for parity with the PyTorch forward signature).
    """
    B, C = x.shape
    H = w1.shape[0]
    assert w1.shape == (H, C) and w2.shape == (C, H)

    # One-time, wrapper-side weight transposes (tiny; keeps XLU relayouts out
    # of the per-tile kernel body).
    w1t = w1.T              # (C, H)
    w2t = w2.T              # (H, C)

    # Batch tile: big (default ~1536 rows, multiple of 8 sublanes) to amortize
    # the ~0.35 us/step grid overhead, but clamped so the "parallel" grid has
    # ~8 steps (>= 2) and both v7x TensorCores get work. No padding of B: the
    # ragged last block is handled by Pallas' masked loads/stores.
    tb = min(_round_up(block_b, 8), _round_up(pl.cdiv(B, 8), 8))
    tb = max(8, tb)
    grid = (pl.cdiv(B, tb),)

    # Advisory cost: the kernel is dominated by reading x and writing out.
    cost = pl.CostEstimate(
        flops=4 * B * C * H + 2 * B * C,
        transcendentals=B * C,                       # sigmoid
        bytes_accessed=2 * B * C * 4 + 2 * C * H * 4,
    )

    return pl.pallas_call(
        _se_attention_kernel,
        out_shape=jax.ShapeDtypeStruct((B, C), x.dtype),
        grid=grid,
        in_specs=[
            pl.BlockSpec((tb, C), lambda i: (i, 0)),   # x: tiled over batch
            pl.BlockSpec((C, H), lambda i: (0, 0)),    # w1t: resident in VMEM
            pl.BlockSpec((H, C), lambda i: (0, 0)),    # w2t: resident in VMEM
        ],
        out_specs=pl.BlockSpec((tb, C), lambda i: (i, 0)),
        compiler_params=pltpu.CompilerParams(
            dimension_semantics=("parallel",),         # batch axis -> 2 TCs on v7x
        ),
        cost_estimate=cost,
    )(x, w1t, w2t)


if __name__ == "__main__":
    # Small shapes consistent with the module: channel=64, reduction=16 -> H=4.
    # B=20 exercises a multi-step batch grid (tb=8, 3 steps) including a
    # ragged last block (rows 16..19 valid, rest masked).
    B, C, R = 20, 64, 16
    H = C // R

    key = jax.random.PRNGKey(0)
    kx, kw1, kw2, ka = jax.random.split(key, 4)

    x = jax.random.normal(kx, (B, C), dtype=jnp.float32)
    # Linear weights, std=0.001 (matching init_weights convention).
    w1 = 0.001 * jax.random.normal(kw1, (H, C), dtype=jnp.float32)  # Linear(C->H).weight
    w2 = 0.001 * jax.random.normal(kw2, (C, H), dtype=jnp.float32)  # Linear(H->C).weight
    # Unused extra forward args (a, aa, aaa) — kept for signature parity.
    a = jax.random.normal(ka, (B, C), dtype=jnp.float32)

    out = se_attention(x, w1, w2, a, a, a)
    jax.block_until_ready(out)

    # Reference check in plain JAX (f32 end-to-end).
    ref = x * jax.nn.sigmoid(jnp.maximum(x @ w1.T, 0.0) @ w2.T)
    assert out.shape == (B, C)
    assert jnp.allclose(out, ref, atol=1e-5, rtol=1e-5)

    # TODO(synk): nn.AdaptiveAvgPool2d (self.avg_pool) is defined but never used
    # in forward, so it is intentionally not implemented.

    print("KERNEL_OK")
</pallas_src>

<mosaic_0001>
module attributes {stable_mosaic.version = 11 : i64} {
  func.func @_se_attention_kernel(%arg0: i32, %arg1: memref<8x64xf32, #tpu.memory_space<vmem>>, %arg2: memref<64x4xf32, #tpu.memory_space<vmem>>, %arg3: memref<4x64xf32, #tpu.memory_space<vmem>>, %arg4: memref<8x64xf32, #tpu.memory_space<vmem>>) attributes {dimension_semantics = [#tpu.dimension_semantics<parallel>], iteration_bounds = array<i64: 3>, scalar_prefetch = 0 : i64, scratch_operands = 0 : i64, tpu.core_type = #tpu.core_type<tc>, window_params = [{transform_indices = @transform_0, window_bounds = array<i64: 8, 64>}, {pipeline_mode = #tpu.pipeline_mode<synchronous>, transform_indices = @transform_1, window_bounds = array<i64: 64, 4>}, {pipeline_mode = #tpu.pipeline_mode<synchronous>, transform_indices = @transform_2, window_bounds = array<i64: 4, 64>}, {transform_indices = @transform_3, window_bounds = array<i64: 8, 64>}]} {
    %c0 = arith.constant 0 : index
    %c0_0 = arith.constant 0 : index
    %0 = vector.load %arg1[%c0, %c0_0] : memref<8x64xf32, #tpu.memory_space<vmem>>, vector<8x64xf32>
    %c0_1 = arith.constant 0 : index
    %c0_2 = arith.constant 0 : index
    %1 = vector.load %arg2[%c0_1, %c0_2] : memref<64x4xf32, #tpu.memory_space<vmem>>, vector<64x4xf32>
    %c0_3 = arith.constant 0 : index
    %c0_4 = arith.constant 0 : index
    %2 = vector.load %arg3[%c0_3, %c0_4] : memref<4x64xf32, #tpu.memory_space<vmem>>, vector<4x64xf32>
    %cst = arith.constant dense<0.000000e+00> : vector<8x4xf32>
    %3 = tpu.matmul %0, %1, %cst {dimension_numbers = #tpu.dot_dimension_numbers<[1], [0], [0], [1], [0, 0, 1, 1], [], []>} : vector<8x64xf32>, vector<64x4xf32>, vector<8x4xf32> -> vector<8x4xf32>
    %cst_5 = arith.constant 0.000000e+00 : f32
    %4 = vector.broadcast %cst_5 : f32 to vector<8x4xf32>
    %5 = arith.maximumf %3, %4 : vector<8x4xf32>
    %cst_6 = arith.constant dense<0.000000e+00> : vector<8x64xf32>
    %6 = tpu.matmul %5, %2, %cst_6 {dimension_numbers = #tpu.dot_dimension_numbers<[1], [0], [0], [1], [0, 0, 1, 1], [], []>} : vector<8x4xf32>, vector<4x64xf32>, vector<8x64xf32> -> vector<8x64xf32>
    %7 = arith.negf %6 : vector<8x64xf32>
    %8 = math.exp %7 : vector<8x64xf32>
    %cst_7 = arith.constant 1.000000e+00 : f32
    %9 = vector.broadcast %cst_7 : f32 to vector<8x64xf32>
    %10 = arith.addf %9, %8 : vector<8x64xf32>
    %11 = arith.divf %9, %10 : vector<8x64xf32>
    %12 = arith.mulf %0, %11 : vector<8x64xf32>
    %c0_8 = arith.constant 0 : index
    %c0_9 = arith.constant 0 : index
    %13 = vector.load %arg4[%c0_8, %c0_9] : memref<8x64xf32, #tpu.memory_space<vmem>>, vector<8x64xf32>
    tpu.vector_store %arg4[%c0_8, %c0_9], %12 {strides = array<i32>} : memref<8x64xf32, #tpu.memory_space<vmem>>, vector<8x64xf32>,
    return
  }
  func.func @transform_0(%arg0: i32) -> (i32, i32) {
    %c0_i32 = arith.constant 0 : i32
    %c0_i32_0 = arith.constant 0 : i32
    return %arg0, %c0_i32 : i32, i32
  }
  func.func @transform_1(%arg0: i32) -> (i32, i32) {
    %c0_i32 = arith.constant 0 : i32
    %c0_i32_0 = arith.constant 0 : i32
    %c0_i32_1 = arith.constant 0 : i32
    return %c0_i32, %c0_i32_0 : i32, i32
  }
  func.func @transform_2(%arg0: i32) -> (i32, i32) {
    %c0_i32 = arith.constant 0 : i32
    %c0_i32_0 = arith.constant 0 : i32
    %c0_i32_1 = arith.constant 0 : i32
    return %c0_i32, %c0_i32_0 : i32, i32
  }
  func.func @transform_3(%arg0: i32) -> (i32, i32) {
    %c0_i32 = arith.constant 0 : i32
    %c0_i32_0 = arith.constant 0 : i32
    return %arg0, %c0_i32 : i32, i32
  }
}

</mosaic_0001>

<bundles_post_ra>
// kernel: tpu_custom_call.1
= control target key start
LH: loop header
LB: loop body
LE: loop exit
PB: predicated region body
PF: predicated region fallthrough
CT: control target
= control target key end

     0   :  { %8 = vsyncpa [#allocation3], 0  ;;  %s734_s0 = inlined_call_operand.vmem [shape: f32[20,64], index: 0, kind: input, shape index: {}]   ;;  %s735_s1 = inlined_call_operand.vmem [shape: f32[64,4], index: 1, kind: input, shape index: {}]   ;;  %s736_s2 = inlined_call_operand.vmem [shape: f32[4,64], index: 2, kind: input, shape index: {}]   ;;  %s737_s3 = inlined_call_operand.hbm [shape: f32[20,64], index: 3, kind: output, shape index: {}]  }
   0x1   :  { %10 = vsyncpa [#allocation3 + $0x1], 0  ;;  %s605_s12 = smov 0   ;;  %s607_s13 = smov 0  }
   0x2   :  { %s609_s14 = smov 0   ;;  %s611_s15 = smov 0  }
   0x3 LB: > { %s626_s16 = sadd.s32 4294967295, %s579_s15   ;;  %s410_s17 = sadd.s32 4294967294, %s579_s15   ;;  %s579_s15 = sphi %s611_s15, %s743_s15   ;;  %s575_s14 = sphi %s609_s14, %s742_s14   ;;  %s571_s13 = sphi %s607_s13, %s741_s13   ;;  %s567_s12 = sphi %s605_s12, %s740_s12  }
   0x4   : > { %s630_s18 = sadd.s32 1, %s579_s15   ;;  %s91_s19 = sadd.s32 1, %s575_s14 }
   0x5   : > { %s88_s20 = ssub.s32 %s579_s15, %s630_s18  ;;  %p101_p0 = scmp.ne.s32.totalorder %s575_s14, %s571_s13 }
   0x6   : > { %p89_p1 = scmp.eq.s32.totalorder %s88_s20, 0  ;;  %p102_p2 = scmp.eq.s32.totalorder %s626_s16, 2 }
   0x7   : > { %p107_p3 = scmp.ne.s32.totalorder %s571_s13, %s567_s12  ;;  %p108_p4 = scmp.eq.s32.totalorder %s410_s17, 2 }
   0x8   : > { %s641_s21 = scalar_select %p89_p1, %s575_s14, %s91_s19  }
   0x9   : > { %p643_p5 = por %p102_p2, %p101_p0  ;;  %p647_p6 = por %p108_p4, %p107_p3 }
   0xa   : > { %p413_p7 = scmp.ge.s32.totalorder %s579_s15, 1  ;;  %p139_p8 = scmp.lt.s32.totalorder %s579_s15, 4 }
   0xc   : > { %p140_p9 = pnand %p413_p7, %p139_p8 }
   0xd   : > { %v167_v0 = vld [vmem:[%s735_s1] sm:$0xff] (!%p140_p9)  ;;  %v168_v1 = vld [vmem:[%s735_s1 + $0x8] sm:$0xff] (!%p140_p9)  ;;  %v169_v2 = vld [vmem:[%s735_s1 + $0x10] sm:$0xff] (!%p140_p9)  ;;  %v581_v3 = vmov (!%p140_p9), 0.0|0.0   ;;  %vm582_vm0 = vmmov (!%p140_p9), 0   ;;  %v583_v6 = vmov (!%p140_p9), 0.0  }
   0xe   : > { %143 = sbr.rel (%p140_p9) target bundleno = 499 (0x1f3), region = 32  ;;  %459 = vmatprep.subr.bf16.mxu0 (!%p140_p9), %v581_v3  ;;  %v460_v4 = vpack.c.bf16 (!%p140_p9), %v168_v1, %v167_v0  ;;  %v170_v5 = vld [vmem:[%s735_s1 + $0x18] sm:$0xff] (!%p140_p9)  ;;  %451 = vmatprep.mubr.msk.f32.mxu0 (!%p140_p9), %vm582_vm0, %v583_v6  ;;  %p162_p10 = scmp.lt.s32.totalorder (!%p140_p9), %s626_s16, 2  ;;  %v171_v8 = vld [vmem:[%s735_s1 + $0x20] sm:$0xff] (!%p140_p9)  ;;  %v172_v9 = vld [vmem:[%s735_s1 + $0x28] sm:$0xff] (!%p140_p9)  ;;  %vm176_vm1 = vcmask (!%p140_p9), 523264  }
   0xf   : > { %454 = vmatprep.subr.mxu1 (!%p140_p9), %v583_v6  ;;  %456 = vmatprep.mubr.msk.f32.mxu1 (!%p140_p9), %vm582_vm0, %v583_v6  ;;  %v463_v7 = vpack.c.bf16 (!%p140_p9), %v170_v5, %v169_v2  ;;  %v466_v10 = vpack.c.bf16 (!%p140_p9), %v172_v9, %v171_v8  ;;  %v173_v11 = vld [vmem:[%s735_s1 + $0x30] sm:$0xff] (!%p140_p9)  ;;  %v174_v12 = vld [vmem:[%s735_s1 + $0x38] sm:$0xff] (!%p140_p9)  ;;  %v175_v15 = vld [vmem:[%s736_s2] sm:$0xf] (!%p140_p9)  ;;  %vm255_vm2 = vcmask (!%p140_p9), 1043456   ;;  %vm251_vm3 = vcmask (!%p140_p9), 31744  }
  0x10   : > { %461 = vmatpush3.bf16.msra.mxu0 (!%p140_p9), %v460_v4  ;;  %v469_v13 = vpack.c.bf16 (!%p140_p9), %v174_v12, %v173_v11  ;;  %455 = vmatpush3.msk.msra.mxu1 (!%p140_p9), %vm255_vm2, %v175_v15  ;;  %s159_s29 = sand.u32 (!%p140_p9), 1, %s571_s13   ;;  %s421_s4 = sshll.u32 (!%p140_p9), %s626_s16, 7 }
  0x11   : > { %462 = vmatprep.subr.bf16.mxu0 (!%p140_p9), %v581_v3  ;;  %s414_s30 = sshll.u32 (!%p140_p9), %s159_s29, 3  ;;  %s338_s10 = scalar_lea.sflag (!%p140_p9), [#allocation3], %s159_s29 }
  0x12   : > { %s161_s5 = scalar_lea.vmem (!%p140_p9), [#allocation2], %s414_s30 }
  0x13   : > { %s351_s6 = sshll.u32 (!%p140_p9), %s161_s5, 4  ;;  %s693_s6 = int_to_ptr.vmem [resolvable:$true] %s351_s6 }
  0x14   : > { %464 = vmatpush3.bf16.msra.mxu0 (!%p140_p9), %v463_v7  ;;  %s517_s11 = scalar_lea.vmem (!%p140_p9), %s693_s6, 128 }
  0x15   : > { %s163_s9 = scalar_select %p162_p10, %s626_s16, 2  ;;  %465 = vmatprep.subr.bf16.mxu0 %v581_v3 }
  0x16   : > { %p518_p11 = scmp.ne.s32.totalorder %s693_s6, %s517_s11  ;;  %s584_s16 = smov [#allocation2]  }
  0x17   : > { %s415_s20 = sshll.u32 %s163_s9, 3  ;;  %s691_s9 = scalar_lea.hbm %s737_s3, %s421_s4 }
  0x18   : > { %467 = vmatpush3.bf16.msra.mxu0 %v466_v10  ;;  %s165_s26 = scalar_lea.vmem %s734_s0, %s415_s20  ;;  %p519_p12 = pnand %p518_p11, %p643_p5 }
  0x19   : > { %468 = vmatprep.subr.bf16.mxu0 %v581_v3  ;;  %v166_v14 = vld [vmem:[%s165_s26] sm:$0xff]  ;;  %s521_s17 = sshll.u32 %s584_s16, 4  ;;  %s522_s17 = int_to_ptr.vmem [resolvable:$false] %s521_s17 }
  0x1a   : > { %p520_p13 = pneg %p519_p12  ;;  %s523_s19 = scalar_lea.vmem %s522_s17, 256 }
  0x1b   : > { %p524_p0 = scmp.lt.s32.totalorder %s693_s6, %s522_s17  ;;  %p525_p1 = scmp.lt.s32.totalorder %s523_s19, %s517_s11 }
  0x1c   : > { %470 = vmatpush3.bf16.msra.mxu0 %v469_v13 }
  0x1d   : > { %p526_p2 = por %p525_p1, %p524_p0 }
  0x1f   : > { %452 = vmatmul.mubr.msk.f32.vlgmr.msra.gmra.mrb[0].mxu0 %vm176_vm1, %v166_v14  ;;  %p527_p3 = pnand %p526_p2, %p520_p13 }
  0xf2   : > { %v246_v16 = vpop.f32.mrb[0].mxu0 }
  0xf3   : > { %v250_v17 = vmax.f32 %v246_v16, 0.0  ;;  %v453_v18 = vpop.f32.mrb[1].mxu0 }
  0xf5   : > { %457 = vmatmul.mubr.msk.f32.vlgmr.msra.gmra.mrb[0].mxu1 %vm251_vm3, %v250_v17 }
 0x1c8   : > { %v325_v19 = vpop.f32.mrb[0].mxu1 }
 0x1c9   : > { %v419_v20 = vmul.f32 -1.442695, %v325_v19  ;;  %v458_v21 = vpop.f32.mrb[1].mxu1 }
 0x1cb   : > { %513 = vpow2.f32 %v419_v20 }
 0x1d5   : > { %v514_v22 = vpop.eup %513 }
 0x1d6   : > { %v332_v23 = vadd.f32 1.0, %v514_v22 }
 0x1d8   : > { %515 = vrcp.f32 %v332_v23 }
 0x1e2   : > { %v516_v24 = vpop.eup %515 }
 0x1e3   : > { %v335_v25 = vmul.f32 %v516_v24, %v166_v14 }
 0x1e5   : > { %336 = vst.msk [vmem:[%s161_s5] sm:$0xff] %vm176_vm1, %v335_v25 }
 0x1e6   : > { %530 = shalt.err (!%p527_p3)
}
 0x1e7   : > { %s531_s20 = scalar_lea.hbm %s691_s9, 128  ;;  %s535_s26 = scalar_lea.hbm %s737_s3, 384 }
 0x1e8   : > { %p532_p4 = scmp.ne.s32.totalorder %s691_s9, %s531_s20  ;;  %p536_p9 = scmp.lt.u32.totalorder %s691_s9, %s737_s3 }
 0x1e9   : > { %p537_p10 = scmp.lt.u32.totalorder %s535_s26, %s531_s20  ;;  %p539_p12 = scmp.lt.u32.totalorder %s531_s20, %s691_s9 }
 0x1ea   : > { %p533_p7 = pnand %p532_p4, %p643_p5 }
 0x1eb   : > { %p538_p11 = por %p537_p10, %p536_p9 }
 0x1ec   : > { %p534_p8 = pneg %p533_p7 }
 0x1ed   : > { %p540_p13 = por %p539_p12, %p538_p11 }
 0x1ef   : > { %p541_p0 = pnand %p540_p13, %p534_p8 }
 0x1f1   : > { %544 = shalt.err (!%p541_p0)
}
 0x1f2   : > { %471 = dma.vmem_to_hbm [thread:$0]  (%p643_p5), %s693_s6, 128, %s691_s9, %s338_s10  }
 0x1f3 PF: > { %p477_p1 = scmp.ge.s32.totalorder %s579_s15, 2  ;;  %s363_s29 = sand.u32 1, %s567_s12  }
 0x1f4   : > { %s364_s30 = scalar_lea.sflag [#allocation3], %s363_s29 }
 0x1f5   : > { %p474_p2 = pnand %p477_p1, %p647_p6 }
 0x1f7   : > { %562 = dma.done.wait (!%p474_p2), %s364_s30, 128  }
 0x1f8   : > { %564 = vsyncadd (!%p474_p2), %s364_s30, 4294967168  ;;  %p13_p3 = scmp.ge.s32.totalorder %s630_s18, 5   ;;  %s740_s12 = smov %s571_s13 }
 0x1f9   : > { %s741_s13 = smov %s575_s14  ;;  %s742_s14 = smov %s641_s21 }
 0x1fa   : > { %s743_s15 = smov %s630_s18  ;;  %15 = sbr.rel (!%p13_p3) target bundleno = 3 (0x3), region = 67 }
 0x201   :  { %369 = vsyncpa [#allocation3], 1 }
 0x202   :  { %371 = vsyncpa [#allocation3 + $0x1], 1 }

</bundles_post_ra>
